<compile_context>
chip_gen: v7x
topology: tpu7x:2x2x1
jax: 0.10.0
libtpu: 0.0.40
codegen_flags: <defaults>
</compile_context>

<pallas_src>
import jax
import jax.numpy as jnp
from jax.experimental import pallas as pl
from jax.experimental.pallas import tpu as pltpu


OUT_PAD = 128   # lane-dense output width (>= output_dim, multiple of 128)
TB_MAX = 1024   # batch-row tile cap (raised from 256 per perf review)


def _round_up(a, m):
    return (a + m - 1) // m * m


def _num_tensorcores():
    """Best-effort TensorCores-per-device (megacore) detection."""
    try:
        kind = jax.devices()[0].device_kind.lower()
    except Exception:  # pragma: no cover - defensive
        return 1
    # v4 and v7x expose 2 TensorCores per device; v5e / v6e expose 1.
    if "v7" in kind or "v4" in kind:
        return 2
    return 1


# ----------------------------------------------------------------------------
# Pallas kernel: full 4-layer MLP for one tile of batch rows.
# ----------------------------------------------------------------------------
def dqn_kernel(
    x_ref,            # (tb, D_in)            f32
    w1_ref, b1_ref,   # (D_in, 128), (1, 128)
    w2_ref, b2_ref,   # (128, 256),  (1, 256)
    w3_ref, b3_ref,   # (256, 128),  (1, 128)
    w4_ref, b4_ref,   # (128, OUT_PAD), (1, OUT_PAD)   (zero-padded cols)
    out_ref,          # (tb, OUT_PAD)
):
    # Matmuls accumulate in f32 on the MXU; bias-add / ReLU run in f32 on the
    # VPU (safe on v5e too, which has no bf16 VPU).  Casting the activations to
    # the weight dtype is a no-op when the weights are f32.
    h = jnp.dot(x_ref[...].astype(w1_ref.dtype), w1_ref[...],
                preferred_element_type=jnp.float32) + b1_ref[...]
    h = jnp.maximum(h, 0.0)

    h = jnp.dot(h.astype(w2_ref.dtype), w2_ref[...],
                preferred_element_type=jnp.float32) + b2_ref[...]
    h = jnp.maximum(h, 0.0)

    h = jnp.dot(h.astype(w3_ref.dtype), w3_ref[...],
                preferred_element_type=jnp.float32) + b3_ref[...]
    h = jnp.maximum(h, 0.0)

    q = jnp.dot(h.astype(w4_ref.dtype), w4_ref[...],
                preferred_element_type=jnp.float32) + b4_ref[...]
    out_ref[...] = q.astype(out_ref.dtype)


# ----------------------------------------------------------------------------
# One-time parameter preparation (hoisted out of the forward pass).
# ----------------------------------------------------------------------------
def prepare_params(params, output_dim, matmul_dtype=jnp.float32):
    """Pad the final layer to OUT_PAD lane-dense columns and cast the MXU
    weight operands to `matmul_dtype` (biases stay f32).  Call once; reuse the
    result for every dqn_forward call."""
    w1, b1, w2, b2, w3, b3, w4, b4 = params
    assert w4.shape[1] == output_dim and output_dim <= OUT_PAD
    w4p = jnp.zeros((w4.shape[0], OUT_PAD), w4.dtype).at[:, :output_dim].set(w4)
    b4p = jnp.zeros((1, OUT_PAD), b4.dtype).at[:, :output_dim].set(b4)
    ws = [w.astype(matmul_dtype) for w in (w1, w2, w3, w4p)]
    bs = [b.astype(jnp.float32) for b in (b1, b2, b3, b4p)]
    return (ws[0], bs[0], ws[1], bs[1], ws[2], bs[2], ws[3], bs[3])


def _choose_tile(batch, num_cores):
    """Pick (tile_rows, padded_batch) minimizing padding while (a) capping the
    tile at TB_MAX and (b) giving >= num_cores grid steps when the batch is big
    enough to be worth splitting across TensorCores."""
    b8 = _round_up(batch, 8)
    n_steps = pl.cdiv(b8, TB_MAX)
    if num_cores > 1 and b8 >= 16 * num_cores:
        n_steps = max(n_steps, num_cores)
    tb = _round_up(pl.cdiv(b8, n_steps), 8)
    bp = tb * pl.cdiv(b8, tb)
    return tb, bp


# ----------------------------------------------------------------------------
# Forward wrapper
# ----------------------------------------------------------------------------
def dqn_forward(state, prepped_params, output_dim, *,
                out_dtype=jnp.float32, num_cores=None):
    """state: (B, input_dim) f32.  prepped_params: output of prepare_params().
    Returns (B, output_dim) q-values in `out_dtype`."""
    B, D = state.shape
    (w1, b1, w2, b2, w3, b3, w4p, b4p) = prepped_params
    assert w1.shape[0] == D

    if num_cores is None:
        num_cores = _num_tensorcores()
    tb, Bp = _choose_tile(B, num_cores)
    if Bp != B:
        state = jnp.concatenate(
            [state, jnp.zeros((Bp - B, D), state.dtype)], axis=0)

    grid = (Bp // tb,)

    def fixed(shape):
        # Full-array weight/bias block, same block for every grid step.
        # (pipeline_mode=pl.Buffered(1) would halve the resident weight
        # footprint but is skipped for portability across jax versions.)
        return pl.BlockSpec(shape, lambda i: (0, 0))

    out = pl.pallas_call(
        dqn_kernel,
        out_shape=jax.ShapeDtypeStruct((Bp, OUT_PAD), out_dtype),
        grid_spec=pltpu.PrefetchScalarGridSpec(
            num_scalar_prefetch=0,
            grid=grid,
            in_specs=[
                pl.BlockSpec((tb, D), lambda i: (i, 0)),   # x row tile
                fixed(w1.shape), fixed(b1.shape),
                fixed(w2.shape), fixed(b2.shape),
                fixed(w3.shape), fixed(b3.shape),
                fixed(w4p.shape), fixed(b4p.shape),
            ],
            out_specs=pl.BlockSpec((tb, OUT_PAD), lambda i: (i, 0)),
        ),
        compiler_params=pltpu.CompilerParams(
            dimension_semantics=("parallel",),
        ),
    )(state, w1, b1, w2, b2, w3, b3, w4p, b4p)

    return out[:B, :output_dim]


# ----------------------------------------------------------------------------
# Deterministic parameter init (PyTorch-default-style uniform bounds).
# Linear weights stored pre-transposed as (in, out); biases as (1, out).
# ----------------------------------------------------------------------------
def init_params(key, input_dim, output_dim):
    keys = jax.random.split(key, 8)

    def u(k, shape, fan_in):
        bound = 1.0 / jnp.sqrt(fan_in)
        return jax.random.uniform(k, shape, jnp.float32, -bound, bound)

    w1 = u(keys[0], (input_dim, 128), input_dim)
    b1 = u(keys[1], (1, 128), input_dim)
    w2 = u(keys[2], (128, 256), 128)
    b2 = u(keys[3], (1, 256), 128)
    w3 = u(keys[4], (256, 128), 256)
    b3 = u(keys[5], (1, 128), 256)
    w4 = u(keys[6], (128, output_dim), 128)
    b4 = u(keys[7], (1, output_dim), 128)
    return (w1, b1, w2, b2, w3, b3, w4, b4)


# ----------------------------------------------------------------------------
# Pure-JAX reference for correctness checks.
# ----------------------------------------------------------------------------
def dqn_reference(state, params):
    (w1, b1, w2, b2, w3, b3, w4, b4) = params
    h = jnp.maximum(state @ w1 + b1, 0.0)
    h = jnp.maximum(h @ w2 + b2, 0.0)
    h = jnp.maximum(h @ w3 + b3, 0.0)
    return h @ w4 + b4


if __name__ == "__main__":
    # Small shapes consistent with the module: DQN(input_dim=(8,), output_dim=4).
    B = 64
    input_dim = 8
    output_dim = 4

    key = jax.random.PRNGKey(0)
    k_x, k_p = jax.random.split(key)
    state = jax.random.normal(k_x, (B, input_dim), dtype=jnp.float32)
    params = init_params(k_p, input_dim, output_dim)
    ref = dqn_reference(state, params)

    # --- f32 MXU operands (default): matches the reference to ~1e-5.
    prepped_f32 = prepare_params(params, output_dim, matmul_dtype=jnp.float32)
    qvals = dqn_forward(state, prepped_f32, output_dim)
    qvals = jax.block_until_ready(qvals)
    assert qvals.shape == (B, output_dim)
    assert jnp.allclose(qvals, ref, rtol=1e-5, atol=1e-5)

    # --- bf16 MXU operands (optional fast path): looser tolerance.
    prepped_bf16 = prepare_params(params, output_dim, matmul_dtype=jnp.bfloat16)
    qvals_bf16 = dqn_forward(state, prepped_bf16, output_dim)
    qvals_bf16 = jax.block_until_ready(qvals_bf16)
    assert qvals_bf16.shape == (B, output_dim)
    assert jnp.allclose(qvals_bf16, ref, rtol=5e-2, atol=5e-2)

    print("KERNEL_OK")
</pallas_src>

<mosaic_0001>
module attributes {stable_mosaic.version = 11 : i64} {
  func.func @dqn_kernel(%arg0: i32, %arg1: memref<64x8xf32, #tpu.memory_space<vmem>>, %arg2: memref<8x128xf32, #tpu.memory_space<vmem>>, %arg3: memref<1x128xf32, #tpu.memory_space<vmem>>, %arg4: memref<128x256xf32, #tpu.memory_space<vmem>>, %arg5: memref<1x256xf32, #tpu.memory_space<vmem>>, %arg6: memref<256x128xf32, #tpu.memory_space<vmem>>, %arg7: memref<1x128xf32, #tpu.memory_space<vmem>>, %arg8: memref<128x128xf32, #tpu.memory_space<vmem>>, %arg9: memref<1x128xf32, #tpu.memory_space<vmem>>, %arg10: memref<64x128xf32, #tpu.memory_space<vmem>>) attributes {dimension_semantics = [#tpu.dimension_semantics<parallel>], iteration_bounds = array<i64: 1>, scalar_prefetch = 0 : i64, scratch_operands = 0 : i64, tpu.core_type = #tpu.core_type<tc>, window_params = [{transform_indices = @transform_0, window_bounds = array<i64: 64, 8>}, {pipeline_mode = #tpu.pipeline_mode<synchronous>, transform_indices = @transform_1, window_bounds = array<i64: 8, 128>}, {pipeline_mode = #tpu.pipeline_mode<synchronous>, transform_indices = @transform_2, window_bounds = array<i64: 1, 128>}, {pipeline_mode = #tpu.pipeline_mode<synchronous>, transform_indices = @transform_3, window_bounds = array<i64: 128, 256>}, {pipeline_mode = #tpu.pipeline_mode<synchronous>, transform_indices = @transform_4, window_bounds = array<i64: 1, 256>}, {pipeline_mode = #tpu.pipeline_mode<synchronous>, transform_indices = @transform_5, window_bounds = array<i64: 256, 128>}, {pipeline_mode = #tpu.pipeline_mode<synchronous>, transform_indices = @transform_6, window_bounds = array<i64: 1, 128>}, {pipeline_mode = #tpu.pipeline_mode<synchronous>, transform_indices = @transform_7, window_bounds = array<i64: 128, 128>}, {pipeline_mode = #tpu.pipeline_mode<synchronous>, transform_indices = @transform_8, window_bounds = array<i64: 1, 128>}, {transform_indices = @transform_9, window_bounds = array<i64: 64, 128>}]} {
    %c0 = arith.constant 0 : index
    %c0_0 = arith.constant 0 : index
    %0 = vector.load %arg1[%c0, %c0_0] : memref<64x8xf32, #tpu.memory_space<vmem>>, vector<64x8xf32>
    %c0_1 = arith.constant 0 : index
    %c0_2 = arith.constant 0 : index
    %1 = vector.load %arg2[%c0_1, %c0_2] : memref<8x128xf32, #tpu.memory_space<vmem>>, vector<8x128xf32>
    %cst = arith.constant dense<0.000000e+00> : vector<64x128xf32>
    %2 = tpu.matmul %0, %1, %cst {dimension_numbers = #tpu.dot_dimension_numbers<[1], [0], [0], [1], [0, 0, 1, 1], [], []>} : vector<64x8xf32>, vector<8x128xf32>, vector<64x128xf32> -> vector<64x128xf32>
    %c0_3 = arith.constant 0 : index
    %c0_4 = arith.constant 0 : index
    %3 = vector.load %arg3[%c0_3, %c0_4] : memref<1x128xf32, #tpu.memory_space<vmem>>, vector<1x128xf32>
    %4 = vector.broadcast %3 : vector<1x128xf32> to vector<64x128xf32>
    %5 = arith.addf %2, %4 : vector<64x128xf32>
    %cst_5 = arith.constant 0.000000e+00 : f32
    %6 = vector.broadcast %cst_5 : f32 to vector<64x128xf32>
    %7 = arith.maximumf %5, %6 : vector<64x128xf32>
    %c0_6 = arith.constant 0 : index
    %c0_7 = arith.constant 0 : index
    %8 = vector.load %arg4[%c0_6, %c0_7] : memref<128x256xf32, #tpu.memory_space<vmem>>, vector<128x256xf32>
    %cst_8 = arith.constant dense<0.000000e+00> : vector<64x256xf32>
    %9 = tpu.matmul %7, %8, %cst_8 {dimension_numbers = #tpu.dot_dimension_numbers<[1], [0], [0], [1], [0, 0, 1, 1], [], []>} : vector<64x128xf32>, vector<128x256xf32>, vector<64x256xf32> -> vector<64x256xf32>
    %c0_9 = arith.constant 0 : index
    %c0_10 = arith.constant 0 : index
    %10 = vector.load %arg5[%c0_9, %c0_10] : memref<1x256xf32, #tpu.memory_space<vmem>>, vector<1x256xf32>
    %11 = vector.broadcast %10 : vector<1x256xf32> to vector<64x256xf32>
    %12 = arith.addf %9, %11 : vector<64x256xf32>
    %cst_11 = arith.constant 0.000000e+00 : f32
    %13 = vector.broadcast %cst_11 : f32 to vector<64x256xf32>
    %14 = arith.maximumf %12, %13 : vector<64x256xf32>
    %c0_12 = arith.constant 0 : index
    %c0_13 = arith.constant 0 : index
    %15 = vector.load %arg6[%c0_12, %c0_13] : memref<256x128xf32, #tpu.memory_space<vmem>>, vector<256x128xf32>
    %cst_14 = arith.constant dense<0.000000e+00> : vector<64x128xf32>
    %16 = tpu.matmul %14, %15, %cst_14 {dimension_numbers = #tpu.dot_dimension_numbers<[1], [0], [0], [1], [0, 0, 1, 1], [], []>} : vector<64x256xf32>, vector<256x128xf32>, vector<64x128xf32> -> vector<64x128xf32>
    %c0_15 = arith.constant 0 : index
    %c0_16 = arith.constant 0 : index
    %17 = vector.load %arg7[%c0_15, %c0_16] : memref<1x128xf32, #tpu.memory_space<vmem>>, vector<1x128xf32>
    %18 = vector.broadcast %17 : vector<1x128xf32> to vector<64x128xf32>
    %19 = arith.addf %16, %18 : vector<64x128xf32>
    %cst_17 = arith.constant 0.000000e+00 : f32
    %20 = vector.broadcast %cst_17 : f32 to vector<64x128xf32>
    %21 = arith.maximumf %19, %20 : vector<64x128xf32>
    %c0_18 = arith.constant 0 : index
    %c0_19 = arith.constant 0 : index
    %22 = vector.load %arg8[%c0_18, %c0_19] : memref<128x128xf32, #tpu.memory_space<vmem>>, vector<128x128xf32>
    %cst_20 = arith.constant dense<0.000000e+00> : vector<64x128xf32>
    %23 = tpu.matmul %21, %22, %cst_20 {dimension_numbers = #tpu.dot_dimension_numbers<[1], [0], [0], [1], [0, 0, 1, 1], [], []>} : vector<64x128xf32>, vector<128x128xf32>, vector<64x128xf32> -> vector<64x128xf32>
    %c0_21 = arith.constant 0 : index
    %c0_22 = arith.constant 0 : index
    %24 = vector.load %arg9[%c0_21, %c0_22] : memref<1x128xf32, #tpu.memory_space<vmem>>, vector<1x128xf32>
    %25 = vector.broadcast %24 : vector<1x128xf32> to vector<64x128xf32>
    %26 = arith.addf %23, %25 : vector<64x128xf32>
    %c0_23 = arith.constant 0 : index
    %c0_24 = arith.constant 0 : index
    %27 = vector.load %arg10[%c0_23, %c0_24] : memref<64x128xf32, #tpu.memory_space<vmem>>, vector<64x128xf32>
    tpu.vector_store %arg10[%c0_23, %c0_24], %26 {strides = array<i32>} : memref<64x128xf32, #tpu.memory_space<vmem>>, vector<64x128xf32>,
    return
  }
  func.func @transform_0(%arg0: i32) -> (i32, i32) {
    %c0_i32 = arith.constant 0 : i32
    %c0_i32_0 = arith.constant 0 : i32
    return %arg0, %c0_i32 : i32, i32
  }
  func.func @transform_1(%arg0: i32) -> (i32, i32) {
    %c0_i32 = arith.constant 0 : i32
    %c0_i32_0 = arith.constant 0 : i32
    %c0_i32_1 = arith.constant 0 : i32
    return %c0_i32, %c0_i32_0 : i32, i32
  }
  func.func @transform_2(%arg0: i32) -> (i32, i32) {
    %c0_i32 = arith.constant 0 : i32
    %c0_i32_0 = arith.constant 0 : i32
    %c0_i32_1 = arith.constant 0 : i32
    return %c0_i32, %c0_i32_0 : i32, i32
  }
  func.func @transform_3(%arg0: i32) -> (i32, i32) {
    %c0_i32 = arith.constant 0 : i32
    %c0_i32_0 = arith.constant 0 : i32
    %c0_i32_1 = arith.constant 0 : i32
    return %c0_i32, %c0_i32_0 : i32, i32
  }
  func.func @transform_4(%arg0: i32) -> (i32, i32) {
    %c0_i32 = arith.constant 0 : i32
    %c0_i32_0 = arith.constant 0 : i32
    %c0_i32_1 = arith.constant 0 : i32
    return %c0_i32, %c0_i32_0 : i32, i32
  }
  func.func @transform_5(%arg0: i32) -> (i32, i32) {
    %c0_i32 = arith.constant 0 : i32
    %c0_i32_0 = arith.constant 0 : i32
    %c0_i32_1 = arith.constant 0 : i32
    return %c0_i32, %c0_i32_0 : i32, i32
  }
  func.func @transform_6(%arg0: i32) -> (i32, i32) {
    %c0_i32 = arith.constant 0 : i32
    %c0_i32_0 = arith.constant 0 : i32
    %c0_i32_1 = arith.constant 0 : i32
    return %c0_i32, %c0_i32_0 : i32, i32
  }
  func.func @transform_7(%arg0: i32) -> (i32, i32) {
    %c0_i32 = arith.constant 0 : i32
    %c0_i32_0 = arith.constant 0 : i32
    %c0_i32_1 = arith.constant 0 : i32
    return %c0_i32, %c0_i32_0 : i32, i32
  }
  func.func @transform_8(%arg0: i32) -> (i32, i32) {
    %c0_i32 = arith.constant 0 : i32
    %c0_i32_0 = arith.constant 0 : i32
    %c0_i32_1 = arith.constant 0 : i32
    return %c0_i32, %c0_i32_0 : i32, i32
  }
  func.func @transform_9(%arg0: i32) -> (i32, i32) {
    %c0_i32 = arith.constant 0 : i32
    %c0_i32_0 = arith.constant 0 : i32
    return %arg0, %c0_i32 : i32, i32
  }
}

</mosaic_0001>

<bundles_post_ra>
// kernel: tpu_custom_call.1
= control target key start
LH: loop header
LB: loop body
LE: loop exit
PB: predicated region body
PF: predicated region fallthrough
CT: control target
= control target key end

     0   :  { %14 = vsyncpa [#allocation3], 0  ;;  %s1277_s0 = inlined_call_operand.vmem [shape: f32[64,8], index: 0, kind: input, shape index: {}]   ;;  %s1278_s1 = inlined_call_operand.vmem [shape: f32[8,128], index: 1, kind: input, shape index: {}]   ;;  %s1279_s2 = inlined_call_operand.vmem [shape: f32[1,128], index: 2, kind: input, shape index: {}]   ;;  %s1280_s3 = inlined_call_operand.hbm [shape: f32[128,256], index: 3, kind: input, shape index: {}]   ;;  %s1281_s4 = inlined_call_operand.vmem [shape: f32[1,256], index: 4, kind: input, shape index: {}]   ;;  %s1282_s5 = inlined_call_operand.hbm [shape: f32[256,128], index: 5, kind: input, shape index: {}]   ;;  %s1283_s6 = inlined_call_operand.vmem [shape: f32[1,128], index: 6, kind: input, shape index: {}]   ;;  %s1284_s7 = inlined_call_operand.hbm [shape: f32[128,128], index: 7, kind: input, shape index: {}]   ;;  %s1285_s8 = inlined_call_operand.vmem [shape: f32[1,128], index: 8, kind: input, shape index: {}]   ;;  %s1286_s9 = inlined_call_operand.hbm [shape: f32[64,128], index: 9, kind: output, shape index: {}]  }
   0x1   :  { %15 = vsyncpa [#allocation6], 0 }
   0x2   :  { %16 = vsyncpa [#allocation4], 0  ;;  %s1080_s30 = smov [#allocation5]   ;;  %s986_s13 = scalar_lea.hbm %s1282_s5, 4096 }
   0x3   :  { %s42_s10 = sshll.u32 %s1080_s30, 4  ;;  %p987_p0 = scmp.ne.s32.totalorder %s1282_s5, %s986_s13  ;;  %s43_s10 = int_to_ptr.vmem [resolvable:$true] %s42_s10 }
   0x4   :  { %p990_p1 = scmp.lt.u32.totalorder %s986_s13, %s1282_s5 }
   0x6   :  { %p992_p2 = pnand %p990_p1, %p987_p0 }
   0x8   :  { %995 = shalt.err (!%p992_p2)
}
   0x9   :  { %s996_s18 = scalar_lea.vmem %s43_s10, 4096  ;;  %p1001_p4 = scmp.lt.s32.totalorder %s43_s10, %s43_s10 }
   0xa   :  { %p997_p3 = scmp.ne.s32.totalorder %s43_s10, %s996_s18  ;;  %p1002_p5 = scmp.lt.s32.totalorder %s996_s18, %s996_s18 }
   0xc   :  { %p1003_p6 = por %p1002_p5, %p1001_p4 }
   0xe   :  { %p1004_p7 = pnand %p1003_p6, %p997_p3 }
  0x10   :  { %1007 = shalt.err (!%p1004_p7)
}
  0x11   :  { %s1081_s19 = smov 128   ;;  %s1082_s20 = smov 8  }
  0x12   :  { %48 = dma.hbm_to_vmem [thread:$0]  %s1282_s5, 4096, %s43_s10, [#allocation6], %s1081_s19, %s1081_s19, %s1082_s20  }
  0x13   :  { %s1083_s23 = smov [#allocation2]   ;;  %s1008_s27 = scalar_lea.hbm %s1280_s3, 4096 }
  0x14   :  { %s28_s24 = sshll.u32 %s1083_s23, 4  ;;  %p1009_p8 = scmp.ne.s32.totalorder %s1280_s3, %s1008_s27  ;;  %s29_s24 = int_to_ptr.vmem [resolvable:$true] %s28_s24 }
  0x15   :  { %p1012_p9 = scmp.lt.u32.totalorder %s1008_s27, %s1280_s3 }
  0x17   :  { %p1014_p10 = pnand %p1012_p9, %p1009_p8 }
  0x19   :  { %1017 = shalt.err (!%p1014_p10)
}
  0x1a   :  { %s1018_s12 = scalar_lea.vmem %s29_s24, 4096  ;;  %p1023_p12 = scmp.lt.s32.totalorder %s29_s24, %s29_s24 }
  0x1b   :  { %p1019_p11 = scmp.ne.s32.totalorder %s29_s24, %s1018_s12  ;;  %p1024_p13 = scmp.lt.s32.totalorder %s1018_s12, %s1018_s12 }
  0x1d   :  { %p1025_p0 = por %p1024_p13, %p1023_p12 }
  0x1f   :  { %p1026_p1 = pnand %p1025_p0, %p1019_p11 }
  0x21   :  { %1029 = shalt.err (!%p1026_p1)
}
  0x22   :  { %s1084_s5 = smov 256   ;;  %s1085_s10 = smov 16  }
  0x23   :  { %34 = dma.hbm_to_vmem [thread:$0]  %s1280_s3, 4096, %s29_s24, [#allocation3], %s1084_s5, %s1084_s5, %s1085_s10  }
  0x24   :  { %s1086_s15 = smov [#allocation7]   ;;  %s1030_s21 = scalar_lea.hbm %s1284_s7, 2048 }
  0x25   :  { %s56_s16 = sshll.u32 %s1086_s15, 4  ;;  %p1031_p2 = scmp.ne.s32.totalorder %s1284_s7, %s1030_s21  ;;  %s57_s16 = int_to_ptr.vmem [resolvable:$true] %s56_s16 }
  0x26   :  { %p1034_p3 = scmp.lt.u32.totalorder %s1030_s21, %s1284_s7 }
  0x28   :  { %p1036_p4 = pnand %p1034_p3, %p1031_p2 }
  0x2a   :  { %1039 = shalt.err (!%p1036_p4)
}
  0x2b   :  { %s1040_s27 = scalar_lea.vmem %s57_s16, 2048  ;;  %p1045_p6 = scmp.lt.s32.totalorder %s57_s16, %s57_s16 }
  0x2c   :  { %p1041_p5 = scmp.ne.s32.totalorder %s57_s16, %s1040_s27  ;;  %p1046_p7 = scmp.lt.s32.totalorder %s1040_s27, %s1040_s27 }
  0x2e   :  { %p1047_p8 = por %p1046_p7, %p1045_p6 }
  0x30   :  { %p1048_p9 = pnand %p1047_p8, %p1041_p5 }
  0x32   :  { %1051 = shalt.err (!%p1048_p9)
}
  0x33   :  { %62 = dma.hbm_to_vmem [thread:$0]  %s1284_s7, 2048, %s57_s16, [#allocation6], %s1081_s19, %s1081_s19, %s1082_s20  }
  0x34   :  { %1074 = dma.done.wait [#allocation3], 4096  }
  0x35   :  { %1075 = vsyncadd [#allocation3], 4294963200 }
  0x36   :  { %1076 = dma.done.wait [#allocation6], 6144  }
  0x37   :  { %1077 = vsyncadd [#allocation6], 4294961152  ;;  %vm90_vm0 = vcmask 64512   ;;  %v82_v0 = vld [vmem:[%s1278_s1] sm:$0xff]  ;;  %v75_v2 = vld [vmem:[%s1277_s0 + $0x8] sm:$0xff]  ;;  %v1087_v57 = vmov 0.0  }
  0x38   :  { %v74_v1 = vld [vmem:[%s1277_s0] sm:$0xff]  ;;  %807 = vmatprep.subr.mxu0 %v82_v0  ;;  %v76_v3 = vld [vmem:[%s1277_s0 + $0x10] sm:$0xff]  ;;  %v77_v4 = vld [vmem:[%s1277_s0 + $0x18] sm:$0xff]  ;;  %336 = vmatprep.mubr.f32.mxu1 %v1087_v57  ;;  %s1088_s24 = smov [#allocation8]  }
  0x39   :  { %809 = vmatprep.mubr.msk.f32.mxu0 %vm90_vm0, %v74_v1  ;;  %808 = vmatpush3.msra.mxu0 %v82_v0  ;;  %v78_v5 = vld [vmem:[%s1277_s0 + $0x20] sm:$0xff]  ;;  %v229_v6 = vld [vmem:[#allocation2 + $0x8] sm:$0xff]  ;;  %v228_v8 = vld [vmem:[#allocation2] sm:$0xff] }
  0x3a   :  { %810 = vmatmul.mubr.msk.f32.vlgmr.msra.gmra.mrb[0].mxu0 %vm90_vm0, %v75_v2  ;;  %v231_v7 = vld [vmem:[#allocation2 + $0x18] sm:$0xff]  ;;  %v230_v10 = vld [vmem:[#allocation2 + $0x10] sm:$0xff]  ;;  %v233_v11 = vld [vmem:[#allocation2 + $0x28] sm:$0xff] }
  0x3b   :  { %812 = vmatprep.mubr.msk.f32.mxu0 %vm90_vm0, %v76_v3  ;;  %v865_v9 = vpack.c.bf16 %v231_v7, %v229_v6  ;;  %v235_v12 = vld [vmem:[#allocation2 + $0x38] sm:$0xff]  ;;  %v867_v13 = vpack.c.bf16 %v230_v10, %v228_v8  ;;  %v232_v15 = vld [vmem:[#allocation2 + $0x20] sm:$0xff]  ;;  %v234_v16 = vld [vmem:[#allocation2 + $0x30] sm:$0xff] }
  0x3c   :  { %v869_v14 = vpack.c.bf16 %v235_v12, %v233_v11  ;;  %v237_v17 = vld [vmem:[#allocation2 + $0x48] sm:$0xff]  ;;  %v239_v18 = vld [vmem:[#allocation2 + $0x58] sm:$0xff]  ;;  %v871_v19 = vpack.c.bf16 %v234_v16, %v232_v15  ;;  %v79_v20 = vld [vmem:[%s1277_s0 + $0x28] sm:$0xff] }
  0x3d   :  { %866 = vmatprep.subr.bf16.mxu1 %v865_v9  ;;  %v873_v21 = vpack.c.bf16 %v239_v18, %v237_v17  ;;  %v236_v22 = vld [vmem:[#allocation2 + $0x40] sm:$0xff]  ;;  %v238_v23 = vld [vmem:[#allocation2 + $0x50] sm:$0xff]  ;;  %v80_v24 = vld [vmem:[%s1277_s0 + $0x30] sm:$0xff] }
  0x3e   :  { %813 = vmatmul.mubr.msk.f32.gmra.mrb[2].mxu0 %vm90_vm0, %v77_v4  ;;  %868 = vmatpush1.bf16.msra.mxu1 %v867_v13  ;;  %v241_v25 = vld [vmem:[#allocation2 + $0x68] sm:$0xff]  ;;  %v243_v26 = vld [vmem:[#allocation2 + $0x78] sm:$0xff]  ;;  %v875_v27 = vpack.c.bf16 %v238_v23, %v236_v22  ;;  %v81_v28 = vld [vmem:[%s1277_s0 + $0x38] sm:$0xff] }
  0x3f   :  { %815 = vmatprep.mubr.msk.f32.mxu0 %vm90_vm0, %v78_v5  ;;  %870 = vmatprep.subr.bf16.mxu1 %v869_v14  ;;  %v877_v29 = vpack.c.bf16 %v243_v26, %v241_v25  ;;  %v240_v30 = vld [vmem:[#allocation2 + $0x60] sm:$0xff]  ;;  %v242_v31 = vld [vmem:[#allocation2 + $0x70] sm:$0xff]  ;;  %v245_v32 = vld [vmem:[#allocation2 + $0x88] sm:$0xff] }
  0x40   :  { %v247_v33 = vld [vmem:[#allocation2 + $0x98] sm:$0xff]  ;;  %v879_v34 = vpack.c.bf16 %v242_v31, %v240_v30  ;;  %v244_v36 = vld [vmem:[#allocation2 + $0x80] sm:$0xff]  ;;  %v246_v37 = vld [vmem:[#allocation2 + $0x90] sm:$0xff] }
  0x41   :  { %v881_v35 = vpack.c.bf16 %v247_v33, %v245_v32  ;;  %v249_v38 = vld [vmem:[#allocation2 + $0xa8] sm:$0xff]  ;;  %v251_v39 = vld [vmem:[#allocation2 + $0xb8] sm:$0xff]  ;;  %v883_v40 = vpack.c.bf16 %v246_v37, %v244_v36  ;;  %v248_v42 = vld [vmem:[#allocation2 + $0xa0] sm:$0xff] }
  0x42   :  { %816 = vmatmul.mubr.msk.f32.gmra.mrb[4].mxu0 %vm90_vm0, %v79_v20  ;;  %872 = vmatpush1.bf16.msra.mxu1 %v871_v19  ;;  %v885_v41 = vpack.c.bf16 %v251_v39, %v249_v38  ;;  %v250_v43 = vld [vmem:[#allocation2 + $0xb0] sm:$0xff]  ;;  %v253_v44 = vld [vmem:[#allocation2 + $0xc8] sm:$0xff]  ;;  %v255_v45 = vld [vmem:[#allocation2 + $0xd8] sm:$0xff] }
  0x43   :  { %818 = vmatprep.mubr.msk.f32.mxu0 %vm90_vm0, %v80_v24  ;;  %874 = vmatprep.subr.bf16.mxu1 %v873_v21  ;;  %v887_v46 = vpack.c.bf16 %v250_v43, %v248_v42  ;;  %v889_v47 = vpack.c.bf16 %v255_v45, %v253_v44  ;;  %v252_v48 = vld [vmem:[#allocation2 + $0xc0] sm:$0xff]  ;;  %v254_v49 = vld [vmem:[#allocation2 + $0xd0] sm:$0xff]  ;;  %v257_v51 = vld [vmem:[#allocation2 + $0xe8] sm:$0xff] }
  0x44   :  { %v891_v50 = vpack.c.bf16 %v254_v49, %v252_v48  ;;  %v259_v52 = vld [vmem:[#allocation2 + $0xf8] sm:$0xff]  ;;  %v256_v54 = vld [vmem:[#allocation2 + $0xe0] sm:$0xff]  ;;  %v258_v55 = vld [vmem:[#allocation2 + $0xf0] sm:$0xff] }
  0x45   :  { %v893_v53 = vpack.c.bf16 %v259_v52, %v257_v51  ;;  %v895_v56 = vpack.c.bf16 %v258_v55, %v256_v54  ;;  %v417_v58 = vld [vmem:[#allocation5 + $0x80] sm:$0xff]  ;;  %v418_v59 = vld [vmem:[#allocation5 + $0x88] sm:$0xff]  ;;  %v419_v63 = vld [vmem:[#allocation5 + $0x90] sm:$0xff] }
  0x46   :  { %819 = vmatmul.mubr.msk.f32.gmra.mrb[6].mxu0 %vm90_vm0, %v81_v28  ;;  %876 = vmatpush1.bf16.msra.mxu1 %v875_v27  ;;  %v401_v60 = vld [vmem:[#allocation5] sm:$0xff]  ;;  %v897_v61 = vpack.c.bf16 %v418_v59, %v417_v58  ;;  %v402_v62 = vld [vmem:[#allocation5 + $0x8] sm:$0xff]  ;;  %v420_v0 = vld [vmem:[#allocation5 + $0x98] sm:$0xff] }
  0x47   :  { %878 = vmatprep.subr.bf16.mxu1 %v877_v29  ;;  %v899_v1 = vpack.c.bf16 %v402_v62, %v401_v60  ;;  %v901_v2 = vpack.c.bf16 %v420_v0, %v419_v63  ;;  %v403_v3 = vld [vmem:[#allocation5 + $0x10] sm:$0xff]  ;;  %v404_v4 = vld [vmem:[#allocation5 + $0x18] sm:$0xff]  ;;  %v421_v5 = vld [vmem:[#allocation5 + $0xa0] sm:$0xff] }
  0x48   :  { %898 = vmatprep.subr.bf16.mxu0 %v897_v61  ;;  %v422_v6 = vld [vmem:[#allocation5 + $0xa8] sm:$0xff]  ;;  %v903_v7 = vpack.c.bf16 %v404_v4, %v403_v3  ;;  %v405_v9 = vld [vmem:[#allocation5 + $0x20] sm:$0xff]  ;;  %v423_v11 = vld [vmem:[#allocation5 + $0xb0] sm:$0xff] }
  0x49   :  { %900 = vmatpush3.bf16.msra.mxu0 %v899_v1  ;;  %v905_v8 = vpack.c.bf16 %v422_v6, %v421_v5  ;;  %v406_v10 = vld [vmem:[#allocation5 + $0x28] sm:$0xff]  ;;  %v424_v12 = vld [vmem:[#allocation5 + $0xb8] sm:$0xff]  ;;  %v407_v15 = vld [vmem:[#allocation5 + $0x30] sm:$0xff] }
  0x4a   :  { %880 = vmatpush1.bf16.msra.mxu1 %v879_v34  ;;  %902 = vmatprep.subr.bf16.mxu0 %v901_v2  ;;  %v907_v13 = vpack.c.bf16 %v406_v10, %v405_v9  ;;  %v909_v14 = vpack.c.bf16 %v424_v12, %v423_v11  ;;  %v408_v16 = vld [vmem:[#allocation5 + $0x38] sm:$0xff]  ;;  %v425_v17 = vld [vmem:[#allocation5 + $0xc0] sm:$0xff]  ;;  %v426_v18 = vld [vmem:[#allocation5 + $0xc8] sm:$0xff] }
  0x4b   :  { %882 = vmatprep.subr.bf16.mxu1 %v881_v35  ;;  %v911_v19 = vpack.c.bf16 %v408_v16, %v407_v15  ;;  %v913_v20 = vpack.c.bf16 %v426_v18, %v425_v17  ;;  %v409_v21 = vld [vmem:[#allocation5 + $0x40] sm:$0xff]  ;;  %v410_v22 = vld [vmem:[#allocation5 + $0x48] sm:$0xff]  ;;  %v427_v23 = vld [vmem:[#allocation5 + $0xd0] sm:$0xff]  ;;  %v262_v18 = vlaneseq }
  0x4c   :  { %v428_v24 = vld [vmem:[#allocation5 + $0xd8] sm:$0xff]  ;;  %v915_v25 = vpack.c.bf16 %v410_v22, %v409_v21  ;;  %v411_v27 = vld [vmem:[#allocation5 + $0x50] sm:$0xff]  ;;  %v429_v29 = vld [vmem:[#allocation5 + $0xe0] sm:$0xff] }
  0x4d   :  { %904 = vmatpush3.bf16.msra.mxu0 %v903_v7  ;;  %v917_v26 = vpack.c.bf16 %v428_v24, %v427_v23  ;;  %v412_v28 = vld [vmem:[#allocation5 + $0x58] sm:$0xff]  ;;  %v430_v30 = vld [vmem:[#allocation5 + $0xe8] sm:$0xff]  ;;  %v413_v59 = vld [vmem:[#allocation5 + $0x60] sm:$0xff] }
  0x4e   :  { %884 = vmatpush1.bf16.msra.mxu1 %v883_v40  ;;  %906 = vmatprep.subr.bf16.mxu0 %v905_v8  ;;  %v919_v31 = vpack.c.bf16 %v412_v28, %v411_v27  ;;  %v921_v32 = vpack.c.bf16 %v430_v30, %v429_v29  ;;  %v707_v33 = vld [vmem:[%s1279_s2] ss:$0 sm:$0xff]  ;;  %v414_v60 = vld [vmem:[#allocation5 + $0x68] sm:$0xff]  ;;  %v431_v62 = vld [vmem:[#allocation5 + $0xf0] sm:$0xff] }
  0x4f   :  { %886 = vmatprep.subr.bf16.mxu1 %v885_v41  ;;  %v923_v61 = vpack.c.bf16 %v414_v60, %v413_v59  ;;  %v432_v63 = vld [vmem:[#allocation5 + $0xf8] sm:$0xff]  ;;  %v415_v1 = vld [vmem:[#allocation5 + $0x70] sm:$0xff]  ;;  %v553_v4 = vld [vmem:[#allocation7] sm:$0xff] }
  0x50   :  { %v925_v0 = vpack.c.bf16 %v432_v63, %v431_v62  ;;  %v416_v2 = vld [vmem:[#allocation5 + $0x78] sm:$0xff]  ;;  %v554_v5 = vld [vmem:[#allocation7 + $0x8] sm:$0xff]  ;;  %v555_v6 = vld [vmem:[#allocation7 + $0x10] sm:$0xff] }
  0x51   :  { %908 = vmatpush3.bf16.msra.mxu0 %v907_v13  ;;  %v927_v3 = vpack.c.bf16 %v416_v2, %v415_v1  ;;  %v929_v7 = vpack.c.bf16 %v554_v5, %v553_v4  ;;  %v556_v8 = vld [vmem:[#allocation7 + $0x18] sm:$0xff]  ;;  %v557_v9 = vld [vmem:[#allocation7 + $0x20] sm:$0xff]  ;;  %v558_v10 = vld [vmem:[#allocation7 + $0x28] sm:$0xff] }
  0x52   :  { %888 = vmatpush1.bf16.msra.mxu1 %v887_v46  ;;  %910 = vmatprep.subr.bf16.mxu0 %v909_v14  ;;  %v937_v11 = vpack.c.bf16 %v558_v10, %v557_v9  ;;  %v559_v12 = vld [vmem:[#allocation7 + $0x30] sm:$0xff]  ;;  %v560_v13 = vld [vmem:[#allocation7 + $0x38] sm:$0xff]  ;;  %v561_v15 = vld [vmem:[#allocation7 + $0x40] sm:$0xff] }
  0x53   :  { %890 = vmatprep.subr.bf16.mxu1 %v889_v47  ;;  %v941_v14 = vpack.c.bf16 %v560_v13, %v559_v12  ;;  %v562_v16 = vld [vmem:[#allocation7 + $0x48] sm:$0xff]  ;;  %v260_v21 = vld [vmem:[%s1281_s4] sm:$0x3]  ;;  %v563_v9 = vld [vmem:[#allocation7 + $0x50] sm:$0xff] }
  0x54   :  { %v1227_v17 = vpack.c.bf16 %v562_v16, %v561_v15  ;;  %v564_v10 = vld [vmem:[#allocation7 + $0x58] sm:$0xff]  ;;  %v565_v12 = vld [vmem:[#allocation7 + $0x60] sm:$0xff]  ;;  %v566_v13 = vld [vmem:[#allocation7 + $0x68] sm:$0xff] }
  0x55   :  { %912 = vmatpush3.bf16.msra.mxu0 %v911_v19  ;;  %v263_v19 = vshrl.u32 %v262_v18, 7  ;;  %v567_v15 = vld [vmem:[#allocation7 + $0x70] sm:$0xff]  ;;  %v568_v16 = vld [vmem:[#allocation7 + $0x78] sm:$0xff] }
  0x56   :  { %892 = vmatpush1.bf16.msra.mxu1 %v891_v50  ;;  %914 = vmatprep.subr.bf16.mxu0 %v913_v20 }
  0x57   :  { %894 = vmatprep.subr.bf16.mxu1 %v893_v53  ;;  %v264_v20 = vsub.s32 0, %v263_v19  ;;  %v268_v22 = vsub.s32 1, %v263_v19  ;;  %v716_v19 = vld [vmem:[%s1283_s6] ss:$0 sm:$0xff] }
  0x59   :  { %916 = vmatpush3.bf16.msra.mxu0 %v915_v25  ;;  %v1234_v23 = vrot.slane %v260_v21, %v264_v20  ;;  %v1236_v24 = vrot.slane %v260_v21, %v268_v22 }
  0x5a   :  { %896 = vmatpush1.bf16.msra.mxu1 %v895_v56  ;;  %918 = vmatprep.subr.bf16.mxu0 %v917_v26 }
  0x5b   :  { %961 = vmatprep.subr.bf16.mxu1 %v929_v7 }
  0x5d   :  { %920 = vmatpush3.bf16.msra.mxu0 %v919_v31 }
  0x5e   :  { %922 = vmatprep.subr.bf16.mxu0 %v921_v32 }
  0x61   :  { %924 = vmatpush3.bf16.msra.mxu0 %v923_v61 }
  0x62   :  { %926 = vmatprep.subr.bf16.mxu0 %v925_v0 }
  0x65   :  { %928 = vmatpush3.bf16.msra.mxu0 %v927_v3 }
  0x66   :  { %930 = vmatprep.subr.bf16.mxu0 %v929_v7 }
 0x10d   :  { %v811_v34 = vpop.f32.mrb[0].mxu0 }
 0x10e   :  { %v181_v35 = vpop.f32.mrb[1].mxu0  ;;  %v187_v37 = vadd.f32 %v811_v34, %v707_v33 }
 0x10f   :  { %v182_v36 = vadd.f32 %v707_v33, %v181_v35 }
 0x110   :  { %v221_v42 = vmax.f32 %v187_v37, 0.0 }
 0x111   :  { %v220_v38 = vmax.f32 %v182_v36, 0.0  ;;  %v814_v39 = vpop.f32.mrb[2].mxu0 }
 0x112   :  { %v191_v40 = vpop.f32.mrb[3].mxu0  ;;  %v197_v46 = vadd.f32 %v814_v39, %v707_v33 }
 0x113   :  { %337 = vmatmul.mubr.f32.vlgmr.msra.gmra.mrb[0].mxu1 %v220_v38  ;;  %v192_v41 = vadd.f32 %v707_v33, %v191_v40 }
 0x114   :  { %342 = vmatprep.mubr.f32.mxu1 %v1087_v57  ;;  %v223_v50 = vmax.f32 %v197_v46, 0.0  ;;  %969 = vmatpush3.bf16.msra.mxu1 %v929_v7 }
 0x115   :  { %v817_v43 = vpop.f32.mrb[4].mxu0  ;;  %v222_v45 = vmax.f32 %v192_v41, 0.0 }
 0x116   :  { %v201_v44 = vpop.f32.mrb[5].mxu0  ;;  %v207_v52 = vadd.f32 %v817_v43, %v707_v33 }
 0x117   :  { %343 = vmatmul.mubr.f32.gmra.mrb[2].mxu1 %v221_v42  ;;  %v202_v49 = vadd.f32 %v707_v33, %v201_v44 }
 0x118   :  { %348 = vmatprep.mubr.f32.mxu1 %v1087_v57  ;;  %v225_v54 = vmax.f32 %v207_v52, 0.0 }
 0x119   :  { %v820_v47 = vpop.f32.mrb[6].mxu0  ;;  %v224_v51 = vmax.f32 %v202_v49, 0.0 }
 0x11a   :  { %v211_v48 = vpop.f32.mrb[7].mxu0  ;;  %v217_v56 = vadd.f32 %v820_v47, %v707_v33 }
 0x11b   :  { %349 = vmatmul.mubr.f32.gmra.mrb[4].mxu1 %v222_v45  ;;  %v212_v53 = vadd.f32 %v707_v33, %v211_v48 }
 0x11c   :  { %354 = vmatprep.mubr.f32.mxu1 %v1087_v57  ;;  %v227_v58 = vmax.f32 %v217_v56, 0.0 }
 0x11d   :  { %v226_v55 = vmax.f32 %v212_v53, 0.0 }
 0x11f   :  { %355 = vmatmul.mubr.f32.gmra.mrb[6].mxu1 %v223_v50 }
 0x120   :  { %360 = vmatprep.mubr.f32.mxu1 %v1087_v57 }
 0x123   :  { %361 = vmatmul.mubr.f32.gmra.mrb[8].mxu1 %v224_v51 }
 0x124   :  { %366 = vmatprep.mubr.f32.mxu1 %v1087_v57 }
 0x127   :  { %367 = vmatmul.mubr.f32.gmra.mrb[10].mxu1 %v225_v54 }
 0x128   :  { %372 = vmatprep.mubr.f32.mxu1 %v1087_v57 }
 0x12b   :  { %373 = vmatmul.mubr.f32.gmra.mrb[12].mxu1 %v226_v55 }
 0x12c   :  { %378 = vmatprep.mubr.f32.mxu1 %v1087_v57  ;;  %v933_v57 = vpack.c.bf16 %v556_v8, %v555_v6 }
 0x12e   :  { %962 = vmatprep.subr.bf16.mxu1 %v933_v57 }
 0x12f   :  { %379 = vmatmul.mubr.f32.gmra.mrb[14].mxu1 %v227_v58 }
 0x130   :  { %970 = vmatpush3.bf16.msra.mxu1 %v933_v57 }
 0x131   :  { %963 = vmatprep.subr.bf16.mxu1 %v937_v11 }
 0x134   :  { %971 = vmatpush3.bf16.msra.mxu1 %v937_v11 }
 0x135   :  { %964 = vmatprep.subr.bf16.mxu1 %v941_v14 }
 0x138   :  { %972 = vmatpush3.bf16.msra.mxu1 %v941_v14 }
 0x139   :  { %965 = vmatprep.subr.bf16.mxu1 %v1227_v17 }
 0x13c   :  { %973 = vmatpush3.bf16.msra.mxu1 %v1227_v17 }
 0x1e6   :  { %v338_v25 = vpop.f32.mrb[0].mxu1 }
 0x1e7   :  { %v339_v26 = vadd.f32 %v338_v25, %v1234_v23  ;;  %v340_v27 = vpop.f32.mrb[1].mxu1 }
 0x1e8   :  { %v341_v28 = vadd.f32 %v340_v27, %v1236_v24 }
 0x1e9   :  { %v385_v31 = vmax.f32 %v339_v26, 0.0 }
 0x1ea   :  { %v386_v29 = vmax.f32 %v341_v28, 0.0  ;;  %v344_v30 = vpop.f32.mrb[2].mxu1 }
 0x1eb   :  { %v345_v32 = vadd.f32 %v344_v30, %v1234_v23  ;;  %v346_v33 = vpop.f32.mrb[3].mxu1 }
 0x1ec   :  { %v347_v34 = vadd.f32 %v346_v33, %v1236_v24  ;;  %504 = vmatprep.mubr.f32.mxu0 %v386_v29 }
 0x1ed   :  { %505 = vmatmul.mubr.f32.vlgmr.msra.gmra.mrb[8].mxu0 %v385_v31  ;;  %v387_v37 = vmax.f32 %v345_v32, 0.0 }
 0x1ee   :  { %v388_v35 = vmax.f32 %v347_v34, 0.0  ;;  %v350_v36 = vpop.f32.mrb[4].mxu1  ;;  %932 = vmatpush3.bf16.msra.mxu0 %v929_v7 }
 0x1ef   :  { %v351_v38 = vadd.f32 %v350_v36, %v1234_v23  ;;  %v352_v39 = vpop.f32.mrb[5].mxu1  ;;  %934 = vmatprep.subr.bf16.mxu0 %v933_v57 }
 0x1f0   :  { %v353_v40 = vadd.f32 %v352_v39, %v1236_v24  ;;  %509 = vmatprep.mubr.f32.mxu0 %v388_v35 }
 0x1f1   :  { %510 = vmatmul.mubr.f32.gmra.mrb[10].mxu0 %v387_v37  ;;  %v389_v43 = vmax.f32 %v351_v38, 0.0 }
 0x1f2   :  { %v390_v41 = vmax.f32 %v353_v40, 0.0  ;;  %v356_v42 = vpop.f32.mrb[6].mxu1  ;;  %936 = vmatpush3.bf16.msra.mxu0 %v933_v57 }
 0x1f3   :  { %v357_v44 = vadd.f32 %v356_v42, %v1234_v23  ;;  %v358_v45 = vpop.f32.mrb[7].mxu1  ;;  %938 = vmatprep.subr.bf16.mxu0 %v937_v11 }
 0x1f4   :  { %v359_v46 = vadd.f32 %v358_v45, %v1236_v24  ;;  %514 = vmatprep.mubr.f32.mxu0 %v390_v41 }
 0x1f5   :  { %515 = vmatmul.mubr.f32.gmra.mrb[12].mxu0 %v389_v43  ;;  %v391_v49 = vmax.f32 %v357_v44, 0.0 }
 0x1f6   :  { %v392_v47 = vmax.f32 %v359_v46, 0.0  ;;  %v362_v48 = vpop.f32.mrb[8].mxu1  ;;  %940 = vmatpush3.bf16.msra.mxu0 %v937_v11  ;;  %v949_v11 = vpack.c.bf16 %v564_v10, %v563_v9 }
 0x1f7   :  { %v363_v50 = vadd.f32 %v362_v48, %v1234_v23  ;;  %v364_v51 = vpop.f32.mrb[9].mxu1  ;;  %942 = vmatprep.subr.bf16.mxu0 %v941_v14 }
 0x1f8   :  { %v365_v52 = vadd.f32 %v364_v51, %v1236_v24  ;;  %519 = vmatprep.mubr.f32.mxu0 %v392_v47  ;;  %966 = vmatprep.subr.bf16.mxu1 %v949_v11 }
 0x1f9   :  { %520 = vmatmul.mubr.f32.gmra.mrb[14].mxu0 %v391_v49  ;;  %v393_v55 = vmax.f32 %v363_v50, 0.0  ;;  %974 = vmatpush3.bf16.msra.mxu1 %v949_v11 }
 0x1fa   :  { %v394_v53 = vmax.f32 %v365_v52, 0.0  ;;  %v368_v54 = vpop.f32.mrb[10].mxu1  ;;  %944 = vmatpush3.bf16.msra.mxu0 %v941_v14  ;;  %v953_v14 = vpack.c.bf16 %v566_v13, %v565_v12 }
 0x1fb   :  { %v369_v56 = vadd.f32 %v368_v54, %v1234_v23  ;;  %v370_v58 = vpop.f32.mrb[11].mxu1  ;;  %946 = vmatprep.subr.bf16.mxu0 %v1227_v17 }
 0x1fc   :  { %v371_v59 = vadd.f32 %v370_v58, %v1236_v24  ;;  %524 = vmatprep.mubr.f32.mxu0 %v394_v53  ;;  %967 = vmatprep.subr.bf16.mxu1 %v953_v14 }
 0x1fd   :  { %525 = vmatmul.mubr.f32.gmra.mrb[16].mxu0 %v393_v55  ;;  %v395_v62 = vmax.f32 %v369_v56, 0.0  ;;  %975 = vmatpush3.bf16.msra.mxu1 %v953_v14 }
 0x1fe   :  { %v396_v60 = vmax.f32 %v371_v59, 0.0  ;;  %v374_v61 = vpop.f32.mrb[12].mxu1  ;;  %948 = vmatpush3.bf16.msra.mxu0 %v1227_v17  ;;  %v957_v17 = vpack.c.bf16 %v568_v16, %v567_v15 }
 0x1ff   :  { %v375_v63 = vadd.f32 %v374_v61, %v1234_v23  ;;  %v376_v0 = vpop.f32.mrb[13].mxu1  ;;  %950 = vmatprep.subr.bf16.mxu0 %v949_v11 }
 0x200   :  { %v377_v1 = vadd.f32 %v376_v0, %v1236_v24  ;;  %529 = vmatprep.mubr.f32.mxu0 %v396_v60  ;;  %968 = vmatprep.subr.bf16.mxu1 %v957_v17  ;;  %v717_v60 = vld [vmem:[%s1285_s8] ss:$0 sm:$0xff]  ;;  %s694_s8 = sshll.u32 %s1088_s24, 4  ;;  %s695_s8 = int_to_ptr.vmem [resolvable:$true] %s694_s8 }
 0x201   :  { %530 = vmatmul.mubr.f32.gmra.mrb[18].mxu0 %v395_v62  ;;  %v397_v4 = vmax.f32 %v375_v63, 0.0  ;;  %976 = vmatpush3.bf16.msra.mxu1 %v957_v17  ;;  %s1052_s28 = scalar_lea.vmem %s695_s8, 1024  ;;  %p1057_p11 = scmp.lt.s32.totalorder %s695_s8, %s695_s8 }
 0x202   :  { %v398_v2 = vmax.f32 %v377_v1, 0.0  ;;  %v380_v3 = vpop.f32.mrb[14].mxu1  ;;  %952 = vmatpush3.bf16.msra.mxu0 %v949_v11  ;;  %p1053_p10 = scmp.ne.s32.totalorder %s695_s8, %s1052_s28  ;;  %p1058_p12 = scmp.lt.s32.totalorder %s1052_s28, %s1052_s28 }
 0x203   :  { %v381_v5 = vadd.f32 %v380_v3, %v1234_v23  ;;  %v382_v6 = vpop.f32.mrb[15].mxu1  ;;  %954 = vmatprep.subr.bf16.mxu0 %v953_v14 }
 0x204   :  { %v383_v7 = vadd.f32 %v382_v6, %v1236_v24  ;;  %534 = vmatprep.mubr.f32.mxu0 %v398_v2  ;;  %p1059_p13 = por %p1058_p12, %p1057_p11 }
 0x205   :  { %535 = vmatmul.mubr.f32.gmra.mrb[20].mxu0 %v397_v4  ;;  %v399_v57 = vmax.f32 %v381_v5, 0.0 }
 0x206   :  { %v400_v8 = vmax.f32 %v383_v7, 0.0  ;;  %956 = vmatpush3.bf16.msra.mxu0 %v953_v14  ;;  %p1060_p0 = pnand %p1059_p13, %p1053_p10 }
 0x207   :  { %958 = vmatprep.subr.bf16.mxu0 %v957_v17 }
 0x208   :  { %539 = vmatprep.mubr.f32.mxu0 %v400_v8 }
 0x209   :  { %540 = vmatmul.mubr.f32.gmra.mrb[22].mxu0 %v399_v57 }
 0x20a   :  { %960 = vmatpush3.bf16.msra.mxu0 %v957_v17 }
 0x2c0   :  { %v759_v18 = vpop.f32.mrb[8].mxu0 }
 0x2c1   :  { %v760_v20 = vpop.f32.mrb[9].mxu0 }
 0x2c2   :  { %v761_v21 = vadd.f32 %v760_v20, %v759_v18 }
 0x2c4   :  { %v507_v22 = vadd.f32 %v761_v21, %v716_v19  ;;  %v762_v23 = vpop.f32.mrb[10].mxu0 }
 0x2c5   :  { %v763_v24 = vpop.f32.mrb[11].mxu0 }
 0x2c6   :  { %v545_v25 = vmax.f32 %v507_v22, 0.0  ;;  %v764_v26 = vadd.f32 %v763_v24, %v762_v23 }
 0x2c8   :  { %v512_v27 = vadd.f32 %v764_v26, %v716_v19  ;;  %v765_v28 = vpop.f32.mrb[12].mxu0  ;;  %853 = vmatprep.mubr.f32.mxu0 %v545_v25 }
 0x2c9   :  { %v766_v29 = vpop.f32.mrb[13].mxu0 }
 0x2ca   :  { %v546_v30 = vmax.f32 %v512_v27, 0.0  ;;  %v767_v31 = vadd.f32 %v766_v29, %v765_v28 }
 0x2cc   :  { %v517_v32 = vadd.f32 %v767_v31, %v716_v19  ;;  %v768_v33 = vpop.f32.mrb[14].mxu0  ;;  %854 = vmatmul.mubr.f32.vlgmr.msra.gmra.mrb[24].mxu0 %v546_v30 }
 0x2cd   :  { %v769_v34 = vpop.f32.mrb[15].mxu0 }
 0x2ce   :  { %v547_v35 = vmax.f32 %v517_v32, 0.0  ;;  %v770_v36 = vadd.f32 %v769_v34, %v768_v33 }
 0x2d0   :  { %v522_v37 = vadd.f32 %v770_v36, %v716_v19  ;;  %v771_v38 = vpop.f32.mrb[16].mxu0  ;;  %856 = vmatprep.mubr.f32.mxu1 %v547_v35 }
 0x2d1   :  { %v772_v39 = vpop.f32.mrb[17].mxu0 }
 0x2d2   :  { %v548_v40 = vmax.f32 %v522_v37, 0.0  ;;  %v773_v41 = vadd.f32 %v772_v39, %v771_v38 }
 0x2d4   :  { %v527_v42 = vadd.f32 %v773_v41, %v716_v19  ;;  %v774_v43 = vpop.f32.mrb[18].mxu0  ;;  %857 = vmatmul.mubr.f32.vlgmr.msra.gmra.mrb[16].mxu1 %v548_v40 }
 0x2d5   :  { %v775_v44 = vpop.f32.mrb[19].mxu0 }
 0x2d6   :  { %v549_v45 = vmax.f32 %v527_v42, 0.0  ;;  %v776_v46 = vadd.f32 %v775_v44, %v774_v43 }
 0x2d8   :  { %v532_v47 = vadd.f32 %v776_v46, %v716_v19  ;;  %v777_v48 = vpop.f32.mrb[20].mxu0  ;;  %859 = vmatprep.mubr.f32.mxu1 %v549_v45 }
 0x2d9   :  { %v778_v49 = vpop.f32.mrb[21].mxu0 }
 0x2da   :  { %v550_v50 = vmax.f32 %v532_v47, 0.0  ;;  %v779_v51 = vadd.f32 %v778_v49, %v777_v48 }
 0x2dc   :  { %v537_v52 = vadd.f32 %v779_v51, %v716_v19  ;;  %v780_v53 = vpop.f32.mrb[22].mxu0  ;;  %860 = vmatmul.mubr.f32.gmra.mrb[18].mxu1 %v550_v50 }
 0x2dd   :  { %v781_v54 = vpop.f32.mrb[23].mxu0 }
 0x2de   :  { %v551_v55 = vmax.f32 %v537_v52, 0.0  ;;  %v782_v56 = vadd.f32 %v781_v54, %v780_v53 }
 0x2e0   :  { %v542_v58 = vadd.f32 %v782_v56, %v716_v19  ;;  %862 = vmatprep.mubr.f32.mxu1 %v551_v55 }
 0x2e2   :  { %v552_v59 = vmax.f32 %v542_v58, 0.0 }
 0x2e4   :  { %863 = vmatmul.mubr.f32.gmra.mrb[20].mxu1 %v552_v59 }
 0x39f   :  { %v855_v61 = vpop.f32.mrb[24].mxu0 }
 0x3a0   :  { %v648_v62 = vadd.f32 %v855_v61, %v717_v60  ;;  %v642_v63 = vpop.f32.mrb[25].mxu0 }
 0x3a1   :  { %v643_v0 = vadd.f32 %v717_v60, %v642_v63 }
 0x3a2   :  { %682 = vst [vmem:[#allocation8 + $0x8] sm:$0xff] %v648_v62 }
 0x3a3   :  { %681 = vst [vmem:[#allocation8] sm:$0xff] %v643_v0 }
 0x3a7   :  { %v858_v1 = vpop.f32.mrb[16].mxu1 }
 0x3a8   :  { %v658_v2 = vadd.f32 %v858_v1, %v717_v60  ;;  %v652_v3 = vpop.f32.mrb[17].mxu1 }
 0x3a9   :  { %v653_v4 = vadd.f32 %v717_v60, %v652_v3 }
 0x3aa   :  { %684 = vst [vmem:[#allocation8 + $0x18] sm:$0xff] %v658_v2 }
 0x3ab   :  { %683 = vst [vmem:[#allocation8 + $0x10] sm:$0xff] %v653_v4 }
 0x3af   :  { %v861_v5 = vpop.f32.mrb[18].mxu1 }
 0x3b0   :  { %v668_v6 = vadd.f32 %v861_v5, %v717_v60  ;;  %v662_v7 = vpop.f32.mrb[19].mxu1 }
 0x3b1   :  { %v663_v8 = vadd.f32 %v717_v60, %v662_v7 }
 0x3b2   :  { %686 = vst [vmem:[#allocation8 + $0x28] sm:$0xff] %v668_v6 }
 0x3b3   :  { %685 = vst [vmem:[#allocation8 + $0x20] sm:$0xff] %v663_v8 }
 0x3b7   :  { %v864_v57 = vpop.f32.mrb[20].mxu1 }
 0x3b8   :  { %v678_v9 = vadd.f32 %v864_v57, %v717_v60  ;;  %v672_v10 = vpop.f32.mrb[21].mxu1 }
 0x3b9   :  { %v673_v11 = vadd.f32 %v717_v60, %v672_v10 }
 0x3ba   :  { %688 = vst [vmem:[#allocation8 + $0x38] sm:$0xff] %v678_v9 }
 0x3bb   :  { %687 = vst [vmem:[#allocation8 + $0x30] sm:$0xff] %v673_v11 }
 0x3bc   :  { %1063 = shalt.err (!%p1060_p0)
}
 0x3bd   :  { %s1064_s11 = scalar_lea.hbm %s1286_s9, 1024 }
 0x3be   :  { %p1065_p1 = scmp.ne.s32.totalorder %s1286_s9, %s1064_s11  ;;  %p1068_p2 = scmp.lt.u32.totalorder %s1064_s11, %s1286_s9 }
 0x3c0   :  { %p1070_p3 = pnand %p1068_p2, %p1065_p1 }
 0x3c2   :  { %1073 = shalt.err (!%p1070_p3)
}
 0x3c3   :  { %700 = dma.vmem_to_hbm [thread:$0]  %s695_s8, 1024, %s1286_s9, [#allocation4], %s1081_s19, %s1081_s19, %s1082_s20  }
 0x3c4   :  { %1078 = dma.done.wait [#allocation4], 1024  }
 0x3c5   :  { %1079 = vsyncadd [#allocation4], 4294966272 }
 0x3c6   :  { %704 = vsyncpa [#allocation3], 1 }
 0x3c7   :  { %705 = vsyncpa [#allocation6], 1 }
 0x3c8   :  { %706 = vsyncpa [#allocation4], 1 }

</bundles_post_ra>
